<compile_context>
chip_gen: v6e
topology: v6e:2x2x1
jax: 0.10.0
libtpu: 0.0.40
codegen_flags: <defaults>
</compile_context>

<pallas_src>
import jax
import jax.numpy as jnp
from jax import lax
from jax.experimental import pallas as pl
from jax.experimental.pallas import tpu as pltpu


# ----------------------------------------------------------------------------
# Pallas kernel: hoisted input projection + unrolled GRU recurrence + linear.
# ----------------------------------------------------------------------------
def _make_gru_classifier_kernel(S, B, H):
    """Builds the fused GRU + linear-head kernel for static (S, B, H)."""

    def kernel(x_ref, wih_ref, whh_ref, bgx_ref, bhhn_ref,
               wlin_ref, blin_ref, o_ref):
        # ---- Hoisted input projection: one (S*B, D) @ (D, 3H) MXU matmul ---
        # bf16 operands (native MXU path), f32 accumulation.
        x_bf16 = x_ref[...].astype(jnp.bfloat16)                 # (S*B, D)
        gx = jnp.dot(x_bf16, wih_ref[...],
                     preferred_element_type=jnp.float32)         # (S*B, 3H)
        # Pre-folded biases: [b_ir + b_hr, b_iz + b_hz, b_in] added once.
        gx = gx + bgx_ref[...]
        # Layout no-op: split the leading (time-major) row dim.
        gx = gx.reshape(S, B, 3 * H)                             # (S, B, 3H)

        whh = whh_ref[...]                                       # (H, 3H) bf16
        bhh_n = bhhn_ref[...]                                    # (1, H)  f32

        # ---- Fully-unrolled recurrence; only h @ W_hh^T stays serial. ------
        # Gate math kept in f32 (v5e has no bf16 VPU/EUP).
        h = jnp.zeros((B, H), jnp.float32)
        for t in range(S):                                       # S is static
            gx_t = gx[t]                                         # (B, 3H)
            gh = jnp.dot(h.astype(jnp.bfloat16), whh,
                         preferred_element_type=jnp.float32)     # (B, 3H)
            rz = jax.nn.sigmoid(gx_t[:, :2 * H] + gh[:, :2 * H])
            r = rz[:, :H]
            z = rz[:, H:]
            n = jnp.tanh(gx_t[:, 2 * H:] + r * (gh[:, 2 * H:] + bhh_n))
            h = (1.0 - z) * n + z * h

        # ---- Final linear head; output padded to 128 lanes (unmasked vst). -
        o_ref[...] = (jnp.dot(h.astype(jnp.bfloat16), wlin_ref[...],
                              preferred_element_type=jnp.float32)
                      + blin_ref[...])

    return kernel


def fuzzy_classifier_forward(x_bsd, kparams):
    """x_bsd: (B, S, D) float32 — same layout the PyTorch module consumes."""
    B, S, D = x_bsd.shape
    H = kparams["w_hh_t"].shape[0]
    C = kparams["num_classes"]
    Cp = kparams["w_lin_t"].shape[1]

    # Time-major flattened rows (row = t*B + b) feed one big input projection;
    # in-kernel per-step access is then a cheap leading-dim index gx[t].
    x2d = jnp.transpose(x_bsd, (1, 0, 2)).reshape(S * B, D)
    # TODO(synk): for large B/S/D, drop this wrapper transpose and slice the
    # hoisted gx per-step from batch-major layout instead (saves one HBM pass).

    vmem = pl.BlockSpec(memory_space=pltpu.MemorySpace.VMEM)
    out_pad = pl.pallas_call(
        _make_gru_classifier_kernel(S, B, H),
        out_shape=jax.ShapeDtypeStruct((B, Cp), jnp.float32),
        in_specs=[vmem] * 7,
        out_specs=vmem,
    )(x2d,
      kparams["w_ih_t"], kparams["w_hh_t"],
      kparams["bias_gx"], kparams["b_hh_n"],
      kparams["w_lin_t"], kparams["b_lin"])
    return out_pad[:, :C]


# ----------------------------------------------------------------------------
# Parameter construction (PyTorch-style uniform init) and kernel-layout prep.
# ----------------------------------------------------------------------------
def make_raw_params(key, bert_dim, hidden, category_num):
    ks = jax.random.split(key, 6)
    bound = 1.0 / float(hidden) ** 0.5
    u = lambda k, shape: jax.random.uniform(k, shape, jnp.float32, -bound, bound)
    return {
        "w_ih": u(ks[0], (3 * hidden, bert_dim)),   # (3H, D)
        "w_hh": u(ks[1], (3 * hidden, hidden)),     # (3H, H)
        "b_ih": u(ks[2], (3 * hidden,)),            # (3H,)
        "b_hh": u(ks[3], (3 * hidden,)),            # (3H,)
        "w_lin": u(ks[4], (category_num, hidden)),  # (C, H)
        "b_lin": u(ks[5], (category_num,)),         # (C,)
    }


def prepare_kernel_params(raw, lane=128):
    H = raw["w_hh"].shape[1]
    C = raw["w_lin"].shape[0]
    Cp = max(lane, ((C + lane - 1) // lane) * lane)   # lane-dense output width
    b_ih, b_hh = raw["b_ih"], raw["b_hh"]
    # Fold r/z biases (gx and gh are plainly summed there); keep b_in in gx,
    # keep b_hn separate (it sits inside the r * (.) term).
    bias_gx = jnp.concatenate(
        [b_ih[:2 * H] + b_hh[:2 * H], b_ih[2 * H:]]).reshape(1, 3 * H)
    w_lin_pad = jnp.zeros((H, Cp), jnp.float32).at[:, :C].set(raw["w_lin"].T)
    b_lin_pad = jnp.zeros((1, Cp), jnp.float32).at[:, :C].set(
        raw["b_lin"].reshape(1, C))
    return {
        "w_ih_t": raw["w_ih"].T.astype(jnp.bfloat16),   # (D, 3H) bf16
        "w_hh_t": raw["w_hh"].T.astype(jnp.bfloat16),   # (H, 3H) bf16
        "bias_gx": bias_gx,                             # (1, 3H) f32
        "b_hh_n": b_hh[2 * H:].reshape(1, H),           # (1, H)  f32
        "w_lin_t": w_lin_pad.astype(jnp.bfloat16),      # (H, Cp) bf16
        "b_lin": b_lin_pad,                             # (1, Cp) f32
        "num_classes": C,
    }


# ----------------------------------------------------------------------------
# Pure-JAX f32 reference (mirrors torch.nn.GRU + nn.Linear semantics).
# ----------------------------------------------------------------------------
def reference_forward(x_bsd, raw):
    H = raw["w_hh"].shape[1]
    B = x_bsd.shape[0]
    x_sbd = jnp.transpose(x_bsd, (1, 0, 2))
    w_ih_t = raw["w_ih"].T
    w_hh_t = raw["w_hh"].T

    def step(h, x_t):
        gx = x_t @ w_ih_t + raw["b_ih"]
        gh = h @ w_hh_t + raw["b_hh"]
        r = jax.nn.sigmoid(gx[:, :H] + gh[:, :H])
        z = jax.nn.sigmoid(gx[:, H:2 * H] + gh[:, H:2 * H])
        n = jnp.tanh(gx[:, 2 * H:] + r * gh[:, 2 * H:])
        return (1.0 - z) * n + z * h, None

    h0 = jnp.zeros((B, H), jnp.float32)
    h_final, _ = lax.scan(step, h0, x_sbd)
    return h_final @ raw["w_lin"].T + raw["b_lin"]


if __name__ == "__main__":
    # Small shapes consistent with the module: X is (batch, seq, bert_dim).
    B, S, D, H, C = 8, 8, 32, 32, 9

    key = jax.random.PRNGKey(0)
    k_x, k_p = jax.random.split(key)
    x = jax.random.normal(k_x, (B, S, D), jnp.float32)
    raw = make_raw_params(k_p, D, H, C)
    kparams = prepare_kernel_params(raw)

    out = fuzzy_classifier_forward(x, kparams)
    out = jax.block_until_ready(out)

    ref = reference_forward(x, raw)
    assert out.shape == (B, C)
    # Tolerance loosened slightly vs pure-f32 reference because the kernel
    # feeds bf16 operands to the MXU (f32 accumulation).
    assert jnp.allclose(out, ref, atol=3e-2, rtol=3e-2), "mismatch vs reference"

    print("KERNEL_OK")
</pallas_src>

<mosaic_0001>
module attributes {stable_mosaic.version = 11 : i64} {
  func.func @kernel(%arg0: memref<64x32xf32, #tpu.memory_space<vmem>>, %arg1: memref<32x96xbf16, #tpu.memory_space<vmem>>, %arg2: memref<32x96xbf16, #tpu.memory_space<vmem>>, %arg3: memref<1x96xf32, #tpu.memory_space<vmem>>, %arg4: memref<1x32xf32, #tpu.memory_space<vmem>>, %arg5: memref<32x128xbf16, #tpu.memory_space<vmem>>, %arg6: memref<1x128xf32, #tpu.memory_space<vmem>>, %arg7: memref<8x128xf32, #tpu.memory_space<vmem>>) attributes {dimension_semantics = [], scalar_prefetch = 0 : i64, scratch_operands = 0 : i64, tpu.core_type = #tpu.core_type<tc>} {
    %c0 = arith.constant 0 : index
    %c0_0 = arith.constant 0 : index
    %0 = vector.load %arg0[%c0, %c0_0] : memref<64x32xf32, #tpu.memory_space<vmem>>, vector<64x32xf32>
    %1 = arith.truncf %0 : vector<64x32xf32> to vector<64x32xbf16>
    %c0_1 = arith.constant 0 : index
    %c0_2 = arith.constant 0 : index
    %2 = vector.load %arg1[%c0_1, %c0_2] : memref<32x96xbf16, #tpu.memory_space<vmem>>, vector<32x96xbf16>
    %cst = arith.constant dense<0.000000e+00> : vector<64x96xf32>
    %3 = tpu.matmul %1, %2, %cst {dimension_numbers = #tpu.dot_dimension_numbers<[1], [0], [0], [1], [0, 0, 1, 1], [], []>} : vector<64x32xbf16>, vector<32x96xbf16>, vector<64x96xf32> -> vector<64x96xf32>
    %c0_3 = arith.constant 0 : index
    %c0_4 = arith.constant 0 : index
    %4 = vector.load %arg3[%c0_3, %c0_4] : memref<1x96xf32, #tpu.memory_space<vmem>>, vector<1x96xf32>
    %5 = vector.broadcast %4 : vector<1x96xf32> to vector<64x96xf32>
    %6 = arith.addf %3, %5 : vector<64x96xf32>
    %7 = vector.shape_cast %6 : vector<64x96xf32> to vector<8x8x96xf32>
    %c0_5 = arith.constant 0 : index
    %c0_6 = arith.constant 0 : index
    %8 = vector.load %arg2[%c0_5, %c0_6] : memref<32x96xbf16, #tpu.memory_space<vmem>>, vector<32x96xbf16>
    %c0_7 = arith.constant 0 : index
    %c0_8 = arith.constant 0 : index
    %9 = vector.load %arg4[%c0_7, %c0_8] : memref<1x32xf32, #tpu.memory_space<vmem>>, vector<1x32xf32>
    %cst_9 = arith.constant 0.000000e+00 : f32
    %10 = vector.broadcast %cst_9 : f32 to vector<8x32xf32>
    %11 = vector.extract_strided_slice %7 {offsets = [0, 0, 0], sizes = [1, 8, 96], strides = [1, 1, 1]} : vector<8x8x96xf32> to vector<1x8x96xf32>
    %12 = vector.shape_cast %11 : vector<1x8x96xf32> to vector<8x96xf32>
    %13 = arith.truncf %10 : vector<8x32xf32> to vector<8x32xbf16>
    %cst_10 = arith.constant dense<0.000000e+00> : vector<8x96xf32>
    %14 = tpu.matmul %13, %8, %cst_10 {dimension_numbers = #tpu.dot_dimension_numbers<[1], [0], [0], [1], [0, 0, 1, 1], [], []>} : vector<8x32xbf16>, vector<32x96xbf16>, vector<8x96xf32> -> vector<8x96xf32>
    %15 = vector.extract_strided_slice %12 {offsets = [0, 0], sizes = [8, 64], strides = [1, 1]} : vector<8x96xf32> to vector<8x64xf32>
    %16 = vector.extract_strided_slice %14 {offsets = [0, 0], sizes = [8, 64], strides = [1, 1]} : vector<8x96xf32> to vector<8x64xf32>
    %17 = arith.addf %15, %16 : vector<8x64xf32>
    %18 = arith.negf %17 : vector<8x64xf32>
    %19 = math.exp %18 : vector<8x64xf32>
    %cst_11 = arith.constant 1.000000e+00 : f32
    %20 = vector.broadcast %cst_11 : f32 to vector<8x64xf32>
    %21 = arith.addf %20, %19 : vector<8x64xf32>
    %22 = arith.divf %20, %21 : vector<8x64xf32>
    %23 = vector.extract_strided_slice %22 {offsets = [0, 0], sizes = [8, 32], strides = [1, 1]} : vector<8x64xf32> to vector<8x32xf32>
    %24 = vector.extract_strided_slice %22 {offsets = [0, 32], sizes = [8, 32], strides = [1, 1]} : vector<8x64xf32> to vector<8x32xf32>
    %25 = vector.extract_strided_slice %12 {offsets = [0, 64], sizes = [8, 32], strides = [1, 1]} : vector<8x96xf32> to vector<8x32xf32>
    %26 = vector.extract_strided_slice %14 {offsets = [0, 64], sizes = [8, 32], strides = [1, 1]} : vector<8x96xf32> to vector<8x32xf32>
    %27 = vector.broadcast %9 : vector<1x32xf32> to vector<8x32xf32>
    %28 = arith.addf %26, %27 : vector<8x32xf32>
    %29 = arith.mulf %23, %28 : vector<8x32xf32>
    %30 = arith.addf %25, %29 : vector<8x32xf32>
    %31 = math.tanh %30 : vector<8x32xf32>
    %cst_12 = arith.constant 1.000000e+00 : f32
    %32 = vector.broadcast %cst_12 : f32 to vector<8x32xf32>
    %33 = arith.subf %32, %24 : vector<8x32xf32>
    %34 = arith.mulf %33, %31 : vector<8x32xf32>
    %35 = arith.mulf %24, %10 : vector<8x32xf32>
    %36 = arith.addf %34, %35 : vector<8x32xf32>
    %37 = vector.extract_strided_slice %7 {offsets = [1, 0, 0], sizes = [1, 8, 96], strides = [1, 1, 1]} : vector<8x8x96xf32> to vector<1x8x96xf32>
    %38 = vector.shape_cast %37 : vector<1x8x96xf32> to vector<8x96xf32>
    %39 = arith.truncf %36 : vector<8x32xf32> to vector<8x32xbf16>
    %cst_13 = arith.constant dense<0.000000e+00> : vector<8x96xf32>
    %40 = tpu.matmul %39, %8, %cst_13 {dimension_numbers = #tpu.dot_dimension_numbers<[1], [0], [0], [1], [0, 0, 1, 1], [], []>} : vector<8x32xbf16>, vector<32x96xbf16>, vector<8x96xf32> -> vector<8x96xf32>
    %41 = vector.extract_strided_slice %38 {offsets = [0, 0], sizes = [8, 64], strides = [1, 1]} : vector<8x96xf32> to vector<8x64xf32>
    %42 = vector.extract_strided_slice %40 {offsets = [0, 0], sizes = [8, 64], strides = [1, 1]} : vector<8x96xf32> to vector<8x64xf32>
    %43 = arith.addf %41, %42 : vector<8x64xf32>
    %44 = arith.negf %43 : vector<8x64xf32>
    %45 = math.exp %44 : vector<8x64xf32>
    %cst_14 = arith.constant 1.000000e+00 : f32
    %46 = vector.broadcast %cst_14 : f32 to vector<8x64xf32>
    %47 = arith.addf %46, %45 : vector<8x64xf32>
    %48 = arith.divf %46, %47 : vector<8x64xf32>
    %49 = vector.extract_strided_slice %48 {offsets = [0, 0], sizes = [8, 32], strides = [1, 1]} : vector<8x64xf32> to vector<8x32xf32>
    %50 = vector.extract_strided_slice %48 {offsets = [0, 32], sizes = [8, 32], strides = [1, 1]} : vector<8x64xf32> to vector<8x32xf32>
    %51 = vector.extract_strided_slice %38 {offsets = [0, 64], sizes = [8, 32], strides = [1, 1]} : vector<8x96xf32> to vector<8x32xf32>
    %52 = vector.extract_strided_slice %40 {offsets = [0, 64], sizes = [8, 32], strides = [1, 1]} : vector<8x96xf32> to vector<8x32xf32>
    %53 = vector.broadcast %9 : vector<1x32xf32> to vector<8x32xf32>
    %54 = arith.addf %52, %53 : vector<8x32xf32>
    %55 = arith.mulf %49, %54 : vector<8x32xf32>
    %56 = arith.addf %51, %55 : vector<8x32xf32>
    %57 = math.tanh %56 : vector<8x32xf32>
    %cst_15 = arith.constant 1.000000e+00 : f32
    %58 = vector.broadcast %cst_15 : f32 to vector<8x32xf32>
    %59 = arith.subf %58, %50 : vector<8x32xf32>
    %60 = arith.mulf %59, %57 : vector<8x32xf32>
    %61 = arith.mulf %50, %36 : vector<8x32xf32>
    %62 = arith.addf %60, %61 : vector<8x32xf32>
    %63 = vector.extract_strided_slice %7 {offsets = [2, 0, 0], sizes = [1, 8, 96], strides = [1, 1, 1]} : vector<8x8x96xf32> to vector<1x8x96xf32>
    %64 = vector.shape_cast %63 : vector<1x8x96xf32> to vector<8x96xf32>
    %65 = arith.truncf %62 : vector<8x32xf32> to vector<8x32xbf16>
    %cst_16 = arith.constant dense<0.000000e+00> : vector<8x96xf32>
    %66 = tpu.matmul %65, %8, %cst_16 {dimension_numbers = #tpu.dot_dimension_numbers<[1], [0], [0], [1], [0, 0, 1, 1], [], []>} : vector<8x32xbf16>, vector<32x96xbf16>, vector<8x96xf32> -> vector<8x96xf32>
    %67 = vector.extract_strided_slice %64 {offsets = [0, 0], sizes = [8, 64], strides = [1, 1]} : vector<8x96xf32> to vector<8x64xf32>
    %68 = vector.extract_strided_slice %66 {offsets = [0, 0], sizes = [8, 64], strides = [1, 1]} : vector<8x96xf32> to vector<8x64xf32>
    %69 = arith.addf %67, %68 : vector<8x64xf32>
    %70 = arith.negf %69 : vector<8x64xf32>
    %71 = math.exp %70 : vector<8x64xf32>
    %cst_17 = arith.constant 1.000000e+00 : f32
    %72 = vector.broadcast %cst_17 : f32 to vector<8x64xf32>
    %73 = arith.addf %72, %71 : vector<8x64xf32>
    %74 = arith.divf %72, %73 : vector<8x64xf32>
    %75 = vector.extract_strided_slice %74 {offsets = [0, 0], sizes = [8, 32], strides = [1, 1]} : vector<8x64xf32> to vector<8x32xf32>
    %76 = vector.extract_strided_slice %74 {offsets = [0, 32], sizes = [8, 32], strides = [1, 1]} : vector<8x64xf32> to vector<8x32xf32>
    %77 = vector.extract_strided_slice %64 {offsets = [0, 64], sizes = [8, 32], strides = [1, 1]} : vector<8x96xf32> to vector<8x32xf32>
    %78 = vector.extract_strided_slice %66 {offsets = [0, 64], sizes = [8, 32], strides = [1, 1]} : vector<8x96xf32> to vector<8x32xf32>
    %79 = vector.broadcast %9 : vector<1x32xf32> to vector<8x32xf32>
    %80 = arith.addf %78, %79 : vector<8x32xf32>
    %81 = arith.mulf %75, %80 : vector<8x32xf32>
    %82 = arith.addf %77, %81 : vector<8x32xf32>
    %83 = math.tanh %82 : vector<8x32xf32>
    %cst_18 = arith.constant 1.000000e+00 : f32
    %84 = vector.broadcast %cst_18 : f32 to vector<8x32xf32>
    %85 = arith.subf %84, %76 : vector<8x32xf32>
    %86 = arith.mulf %85, %83 : vector<8x32xf32>
    %87 = arith.mulf %76, %62 : vector<8x32xf32>
    %88 = arith.addf %86, %87 : vector<8x32xf32>
    %89 = vector.extract_strided_slice %7 {offsets = [3, 0, 0], sizes = [1, 8, 96], strides = [1, 1, 1]} : vector<8x8x96xf32> to vector<1x8x96xf32>
    %90 = vector.shape_cast %89 : vector<1x8x96xf32> to vector<8x96xf32>
    %91 = arith.truncf %88 : vector<8x32xf32> to vector<8x32xbf16>
    %cst_19 = arith.constant dense<0.000000e+00> : vector<8x96xf32>
    %92 = tpu.matmul %91, %8, %cst_19 {dimension_numbers = #tpu.dot_dimension_numbers<[1], [0], [0], [1], [0, 0, 1, 1], [], []>} : vector<8x32xbf16>, vector<32x96xbf16>, vector<8x96xf32> -> vector<8x96xf32>
    %93 = vector.extract_strided_slice %90 {offsets = [0, 0], sizes = [8, 64], strides = [1, 1]} : vector<8x96xf32> to vector<8x64xf32>
    %94 = vector.extract_strided_slice %92 {offsets = [0, 0], sizes = [8, 64], strides = [1, 1]} : vector<8x96xf32> to vector<8x64xf32>
    %95 = arith.addf %93, %94 : vector<8x64xf32>
    %96 = arith.negf %95 : vector<8x64xf32>
    %97 = math.exp %96 : vector<8x64xf32>
    %cst_20 = arith.constant 1.000000e+00 : f32
    %98 = vector.broadcast %cst_20 : f32 to vector<8x64xf32>
    %99 = arith.addf %98, %97 : vector<8x64xf32>
    %100 = arith.divf %98, %99 : vector<8x64xf32>
    %101 = vector.extract_strided_slice %100 {offsets = [0, 0], sizes = [8, 32], strides = [1, 1]} : vector<8x64xf32> to vector<8x32xf32>
    %102 = vector.extract_strided_slice %100 {offsets = [0, 32], sizes = [8, 32], strides = [1, 1]} : vector<8x64xf32> to vector<8x32xf32>
    %103 = vector.extract_strided_slice %90 {offsets = [0, 64], sizes = [8, 32], strides = [1, 1]} : vector<8x96xf32> to vector<8x32xf32>
    %104 = vector.extract_strided_slice %92 {offsets = [0, 64], sizes = [8, 32], strides = [1, 1]} : vector<8x96xf32> to vector<8x32xf32>
    %105 = vector.broadcast %9 : vector<1x32xf32> to vector<8x32xf32>
    %106 = arith.addf %104, %105 : vector<8x32xf32>
    %107 = arith.mulf %101, %106 : vector<8x32xf32>
    %108 = arith.addf %103, %107 : vector<8x32xf32>
    %109 = math.tanh %108 : vector<8x32xf32>
    %cst_21 = arith.constant 1.000000e+00 : f32
    %110 = vector.broadcast %cst_21 : f32 to vector<8x32xf32>
    %111 = arith.subf %110, %102 : vector<8x32xf32>
    %112 = arith.mulf %111, %109 : vector<8x32xf32>
    %113 = arith.mulf %102, %88 : vector<8x32xf32>
    %114 = arith.addf %112, %113 : vector<8x32xf32>
    %115 = vector.extract_strided_slice %7 {offsets = [4, 0, 0], sizes = [1, 8, 96], strides = [1, 1, 1]} : vector<8x8x96xf32> to vector<1x8x96xf32>
    %116 = vector.shape_cast %115 : vector<1x8x96xf32> to vector<8x96xf32>
    %117 = arith.truncf %114 : vector<8x32xf32> to vector<8x32xbf16>
    %cst_22 = arith.constant dense<0.000000e+00> : vector<8x96xf32>
    %118 = tpu.matmul %117, %8, %cst_22 {dimension_numbers = #tpu.dot_dimension_numbers<[1], [0], [0], [1], [0, 0, 1, 1], [], []>} : vector<8x32xbf16>, vector<32x96xbf16>, vector<8x96xf32> -> vector<8x96xf32>
    %119 = vector.extract_strided_slice %116 {offsets = [0, 0], sizes = [8, 64], strides = [1, 1]} : vector<8x96xf32> to vector<8x64xf32>
    %120 = vector.extract_strided_slice %118 {offsets = [0, 0], sizes = [8, 64], strides = [1, 1]} : vector<8x96xf32> to vector<8x64xf32>
    %121 = arith.addf %119, %120 : vector<8x64xf32>
    %122 = arith.negf %121 : vector<8x64xf32>
    %123 = math.exp %122 : vector<8x64xf32>
    %cst_23 = arith.constant 1.000000e+00 : f32
    %124 = vector.broadcast %cst_23 : f32 to vector<8x64xf32>
    %125 = arith.addf %124, %123 : vector<8x64xf32>
    %126 = arith.divf %124, %125 : vector<8x64xf32>
    %127 = vector.extract_strided_slice %126 {offsets = [0, 0], sizes = [8, 32], strides = [1, 1]} : vector<8x64xf32> to vector<8x32xf32>
    %128 = vector.extract_strided_slice %126 {offsets = [0, 32], sizes = [8, 32], strides = [1, 1]} : vector<8x64xf32> to vector<8x32xf32>
    %129 = vector.extract_strided_slice %116 {offsets = [0, 64], sizes = [8, 32], strides = [1, 1]} : vector<8x96xf32> to vector<8x32xf32>
    %130 = vector.extract_strided_slice %118 {offsets = [0, 64], sizes = [8, 32], strides = [1, 1]} : vector<8x96xf32> to vector<8x32xf32>
    %131 = vector.broadcast %9 : vector<1x32xf32> to vector<8x32xf32>
    %132 = arith.addf %130, %131 : vector<8x32xf32>
    %133 = arith.mulf %127, %132 : vector<8x32xf32>
    %134 = arith.addf %129, %133 : vector<8x32xf32>
    %135 = math.tanh %134 : vector<8x32xf32>
    %cst_24 = arith.constant 1.000000e+00 : f32
    %136 = vector.broadcast %cst_24 : f32 to vector<8x32xf32>
    %137 = arith.subf %136, %128 : vector<8x32xf32>
    %138 = arith.mulf %137, %135 : vector<8x32xf32>
    %139 = arith.mulf %128, %114 : vector<8x32xf32>
    %140 = arith.addf %138, %139 : vector<8x32xf32>
    %141 = vector.extract_strided_slice %7 {offsets = [5, 0, 0], sizes = [1, 8, 96], strides = [1, 1, 1]} : vector<8x8x96xf32> to vector<1x8x96xf32>
    %142 = vector.shape_cast %141 : vector<1x8x96xf32> to vector<8x96xf32>
    %143 = arith.truncf %140 : vector<8x32xf32> to vector<8x32xbf16>
    %cst_25 = arith.constant dense<0.000000e+00> : vector<8x96xf32>
    %144 = tpu.matmul %143, %8, %cst_25 {dimension_numbers = #tpu.dot_dimension_numbers<[1], [0], [0], [1], [0, 0, 1, 1], [], []>} : vector<8x32xbf16>, vector<32x96xbf16>, vector<8x96xf32> -> vector<8x96xf32>
    %145 = vector.extract_strided_slice %142 {offsets = [0, 0], sizes = [8, 64], strides = [1, 1]} : vector<8x96xf32> to vector<8x64xf32>
    %146 = vector.extract_strided_slice %144 {offsets = [0, 0], sizes = [8, 64], strides = [1, 1]} : vector<8x96xf32> to vector<8x64xf32>
    %147 = arith.addf %145, %146 : vector<8x64xf32>
    %148 = arith.negf %147 : vector<8x64xf32>
    %149 = math.exp %148 : vector<8x64xf32>
    %cst_26 = arith.constant 1.000000e+00 : f32
    %150 = vector.broadcast %cst_26 : f32 to vector<8x64xf32>
    %151 = arith.addf %150, %149 : vector<8x64xf32>
    %152 = arith.divf %150, %151 : vector<8x64xf32>
    %153 = vector.extract_strided_slice %152 {offsets = [0, 0], sizes = [8, 32], strides = [1, 1]} : vector<8x64xf32> to vector<8x32xf32>
    %154 = vector.extract_strided_slice %152 {offsets = [0, 32], sizes = [8, 32], strides = [1, 1]} : vector<8x64xf32> to vector<8x32xf32>
    %155 = vector.extract_strided_slice %142 {offsets = [0, 64], sizes = [8, 32], strides = [1, 1]} : vector<8x96xf32> to vector<8x32xf32>
    %156 = vector.extract_strided_slice %144 {offsets = [0, 64], sizes = [8, 32], strides = [1, 1]} : vector<8x96xf32> to vector<8x32xf32>
    %157 = vector.broadcast %9 : vector<1x32xf32> to vector<8x32xf32>
    %158 = arith.addf %156, %157 : vector<8x32xf32>
    %159 = arith.mulf %153, %158 : vector<8x32xf32>
    %160 = arith.addf %155, %159 : vector<8x32xf32>
    %161 = math.tanh %160 : vector<8x32xf32>
    %cst_27 = arith.constant 1.000000e+00 : f32
    %162 = vector.broadcast %cst_27 : f32 to vector<8x32xf32>
    %163 = arith.subf %162, %154 : vector<8x32xf32>
    %164 = arith.mulf %163, %161 : vector<8x32xf32>
    %165 = arith.mulf %154, %140 : vector<8x32xf32>
    %166 = arith.addf %164, %165 : vector<8x32xf32>
    %167 = vector.extract_strided_slice %7 {offsets = [6, 0, 0], sizes = [1, 8, 96], strides = [1, 1, 1]} : vector<8x8x96xf32> to vector<1x8x96xf32>
    %168 = vector.shape_cast %167 : vector<1x8x96xf32> to vector<8x96xf32>
    %169 = arith.truncf %166 : vector<8x32xf32> to vector<8x32xbf16>
    %cst_28 = arith.constant dense<0.000000e+00> : vector<8x96xf32>
    %170 = tpu.matmul %169, %8, %cst_28 {dimension_numbers = #tpu.dot_dimension_numbers<[1], [0], [0], [1], [0, 0, 1, 1], [], []>} : vector<8x32xbf16>, vector<32x96xbf16>, vector<8x96xf32> -> vector<8x96xf32>
    %171 = vector.extract_strided_slice %168 {offsets = [0, 0], sizes = [8, 64], strides = [1, 1]} : vector<8x96xf32> to vector<8x64xf32>
    %172 = vector.extract_strided_slice %170 {offsets = [0, 0], sizes = [8, 64], strides = [1, 1]} : vector<8x96xf32> to vector<8x64xf32>
    %173 = arith.addf %171, %172 : vector<8x64xf32>
    %174 = arith.negf %173 : vector<8x64xf32>
    %175 = math.exp %174 : vector<8x64xf32>
    %cst_29 = arith.constant 1.000000e+00 : f32
    %176 = vector.broadcast %cst_29 : f32 to vector<8x64xf32>
    %177 = arith.addf %176, %175 : vector<8x64xf32>
    %178 = arith.divf %176, %177 : vector<8x64xf32>
    %179 = vector.extract_strided_slice %178 {offsets = [0, 0], sizes = [8, 32], strides = [1, 1]} : vector<8x64xf32> to vector<8x32xf32>
    %180 = vector.extract_strided_slice %178 {offsets = [0, 32], sizes = [8, 32], strides = [1, 1]} : vector<8x64xf32> to vector<8x32xf32>
    %181 = vector.extract_strided_slice %168 {offsets = [0, 64], sizes = [8, 32], strides = [1, 1]} : vector<8x96xf32> to vector<8x32xf32>
    %182 = vector.extract_strided_slice %170 {offsets = [0, 64], sizes = [8, 32], strides = [1, 1]} : vector<8x96xf32> to vector<8x32xf32>
    %183 = vector.broadcast %9 : vector<1x32xf32> to vector<8x32xf32>
    %184 = arith.addf %182, %183 : vector<8x32xf32>
    %185 = arith.mulf %179, %184 : vector<8x32xf32>
    %186 = arith.addf %181, %185 : vector<8x32xf32>
    %187 = math.tanh %186 : vector<8x32xf32>
    %cst_30 = arith.constant 1.000000e+00 : f32
    %188 = vector.broadcast %cst_30 : f32 to vector<8x32xf32>
    %189 = arith.subf %188, %180 : vector<8x32xf32>
    %190 = arith.mulf %189, %187 : vector<8x32xf32>
    %191 = arith.mulf %180, %166 : vector<8x32xf32>
    %192 = arith.addf %190, %191 : vector<8x32xf32>
    %193 = vector.extract_strided_slice %7 {offsets = [7, 0, 0], sizes = [1, 8, 96], strides = [1, 1, 1]} : vector<8x8x96xf32> to vector<1x8x96xf32>
    %194 = vector.shape_cast %193 : vector<1x8x96xf32> to vector<8x96xf32>
    %195 = arith.truncf %192 : vector<8x32xf32> to vector<8x32xbf16>
    %cst_31 = arith.constant dense<0.000000e+00> : vector<8x96xf32>
    %196 = tpu.matmul %195, %8, %cst_31 {dimension_numbers = #tpu.dot_dimension_numbers<[1], [0], [0], [1], [0, 0, 1, 1], [], []>} : vector<8x32xbf16>, vector<32x96xbf16>, vector<8x96xf32> -> vector<8x96xf32>
    %197 = vector.extract_strided_slice %194 {offsets = [0, 0], sizes = [8, 64], strides = [1, 1]} : vector<8x96xf32> to vector<8x64xf32>
    %198 = vector.extract_strided_slice %196 {offsets = [0, 0], sizes = [8, 64], strides = [1, 1]} : vector<8x96xf32> to vector<8x64xf32>
    %199 = arith.addf %197, %198 : vector<8x64xf32>
    %200 = arith.negf %199 : vector<8x64xf32>
    %201 = math.exp %200 : vector<8x64xf32>
    %cst_32 = arith.constant 1.000000e+00 : f32
    %202 = vector.broadcast %cst_32 : f32 to vector<8x64xf32>
    %203 = arith.addf %202, %201 : vector<8x64xf32>
    %204 = arith.divf %202, %203 : vector<8x64xf32>
    %205 = vector.extract_strided_slice %204 {offsets = [0, 0], sizes = [8, 32], strides = [1, 1]} : vector<8x64xf32> to vector<8x32xf32>
    %206 = vector.extract_strided_slice %204 {offsets = [0, 32], sizes = [8, 32], strides = [1, 1]} : vector<8x64xf32> to vector<8x32xf32>
    %207 = vector.extract_strided_slice %194 {offsets = [0, 64], sizes = [8, 32], strides = [1, 1]} : vector<8x96xf32> to vector<8x32xf32>
    %208 = vector.extract_strided_slice %196 {offsets = [0, 64], sizes = [8, 32], strides = [1, 1]} : vector<8x96xf32> to vector<8x32xf32>
    %209 = vector.broadcast %9 : vector<1x32xf32> to vector<8x32xf32>
    %210 = arith.addf %208, %209 : vector<8x32xf32>
    %211 = arith.mulf %205, %210 : vector<8x32xf32>
    %212 = arith.addf %207, %211 : vector<8x32xf32>
    %213 = math.tanh %212 : vector<8x32xf32>
    %cst_33 = arith.constant 1.000000e+00 : f32
    %214 = vector.broadcast %cst_33 : f32 to vector<8x32xf32>
    %215 = arith.subf %214, %206 : vector<8x32xf32>
    %216 = arith.mulf %215, %213 : vector<8x32xf32>
    %217 = arith.mulf %206, %192 : vector<8x32xf32>
    %218 = arith.addf %216, %217 : vector<8x32xf32>
    %219 = arith.truncf %218 : vector<8x32xf32> to vector<8x32xbf16>
    %c0_34 = arith.constant 0 : index
    %c0_35 = arith.constant 0 : index
    %220 = vector.load %arg5[%c0_34, %c0_35] : memref<32x128xbf16, #tpu.memory_space<vmem>>, vector<32x128xbf16>
    %cst_36 = arith.constant dense<0.000000e+00> : vector<8x128xf32>
    %221 = tpu.matmul %219, %220, %cst_36 {dimension_numbers = #tpu.dot_dimension_numbers<[1], [0], [0], [1], [0, 0, 1, 1], [], []>} : vector<8x32xbf16>, vector<32x128xbf16>, vector<8x128xf32> -> vector<8x128xf32>
    %c0_37 = arith.constant 0 : index
    %c0_38 = arith.constant 0 : index
    %222 = vector.load %arg6[%c0_37, %c0_38] : memref<1x128xf32, #tpu.memory_space<vmem>>, vector<1x128xf32>
    %223 = vector.broadcast %222 : vector<1x128xf32> to vector<8x128xf32>
    %224 = arith.addf %221, %223 : vector<8x128xf32>
    %c0_39 = arith.constant 0 : index
    %c0_40 = arith.constant 0 : index
    %225 = vector.load %arg7[%c0_39, %c0_40] : memref<8x128xf32, #tpu.memory_space<vmem>>, vector<8x128xf32>
    tpu.vector_store %arg7[%c0_39, %c0_40], %224 {strides = array<i32>} : memref<8x128xf32, #tpu.memory_space<vmem>>, vector<8x128xf32>,
    return
  }
}

</mosaic_0001>

<bundles_post_ra>
// kernel: tpu_custom_call.1
= control target key start
LH: loop header
LB: loop body
LE: loop exit
PB: predicated region body
PF: predicated region fallthrough
CT: control target
= control target key end

     0   :  { %v1067_v1 = vmov 0.0   ;;  %vm1068_vm0 = vmmov 0   ;;  %vm63_vm1 = vcmask 261120   ;;  %s1069_s17 = smov 64   ;;  %s1306_s0 = inlined_call_operand.vmem [shape: f32[64,32], index: 0, kind: input, shape index: {}]   ;;  %s1307_s1 = inlined_call_operand.vmem [shape: bf16[32,96], index: 1, kind: input, shape index: {}]   ;;  %s1308_s2 = inlined_call_operand.vmem [shape: bf16[32,96], index: 2, kind: input, shape index: {}]   ;;  %s1309_s3 = inlined_call_operand.vmem [shape: f32[1,96], index: 3, kind: input, shape index: {}]   ;;  %s1310_s4 = inlined_call_operand.vmem [shape: f32[1,32], index: 4, kind: input, shape index: {}]   ;;  %s1311_s5 = inlined_call_operand.vmem [shape: bf16[32,128], index: 5, kind: input, shape index: {}]   ;;  %s1312_s6 = inlined_call_operand.vmem [shape: f32[1,128], index: 6, kind: input, shape index: {}]   ;;  %s1313_s7 = inlined_call_operand.hbm [shape: f32[8,128], index: 7, kind: output, shape index: {}]  }
   0x1   :  { %v991_v0 = vld [vmem:[%s1307_s1 + $0x8] sm:$0xff]   ;;  %913 = vmatprep.subr.bf16.mxu1 %v1067_v1  ;;  %v993_v3 = vld [vmem:[%s1307_s1] sm:$0xff]   ;;  %917 = vmatprep.mubr.msk.bf16.mxu1 %vm1068_vm0, %v1067_v1  ;;  %v30_v7 = vld [vmem:[%s1306_s0 + $0x10] sm:$0xff] }
   0x2   :  { %v1120_v2 = vld [vmem:[%s1308_s2 + $0x8] sm:$0xff]   ;;  %901 = vmatprep.subr.bf16.mxu0 %v991_v0  ;;  %v1131_v4 = vld [vmem:[%s1308_s2] sm:$0xff]   ;;  %v31_v9 = vld [vmem:[%s1306_s0 + $0x18] sm:$0xff] }
   0x3   :  { %914 = vmatpush3.bf16.msra.mxu1 %v1120_v2  ;;  %902 = vmatpush3.bf16.msra.mxu0 %v991_v0  ;;  %v28_v5 = vld [vmem:[%s1306_s0] sm:$0xff]  ;;  %v29_v6 = vld [vmem:[%s1306_s0 + $0x8] sm:$0xff]  ;;  %v37_v11 = vpack.c.bf16 %v31_v9, %v30_v7 }
   0x4   :  { %915 = vmatprep.subr.bf16.mxu1 %v1067_v1  ;;  %903 = vmatprep.subr.bf16.mxu0 %v993_v3  ;;  %v36_v8 = vpack.c.bf16 %v29_v6, %v28_v5  ;;  %v849_v10 = vld [vmem:[%s1310_s4] ss:$0 sm:$0xff] }
   0x5   :  { %213 = vrot.lane.b32.xlu0 %v849_v10, %s1069_s17 }
   0x7   :  { %916 = vmatpush3.bf16.msra.mxu1 %v1131_v4  ;;  %904 = vmatpush3.bf16.msra.mxu0 %v993_v3 }
   0x8   :  { %12 = vsyncpa [#allocation3], 0  ;;  %905 = vmatprep.mubr.msk.bf16.mxu0 %vm63_vm1, %v36_v8  ;;  %921 = vmatprep.subr.bf16.mxu1 %v1067_v1  ;;  %v1070_v12 = vmov 0   ;;  %v1174_v20 = vld [vmem:[%s1309_s3] ss:$0 sm:$0xff]  ;;  %s1071_s3 = smov 96  }
   0x9   :  { %929 = vmatprep.subr.bf16.mxu0 %v1067_v1  ;;  %v32_v57 = vld [vmem:[%s1306_s0 + $0x20] sm:$0xff]  ;;  %v33_v58 = vld [vmem:[%s1306_s0 + $0x28] sm:$0xff]  ;;  %v34_v59 = vld [vmem:[%s1306_s0 + $0x30] sm:$0xff] }
   0xa   :  { %918 = vmatmul.mubr.bf16.vlgmr.msra.gmra.mxu1 %v1070_v12  ;;  %906 = vmatmul.mubr.msk.bf16.vlgmr.msra.gmra.mxu0 %vm63_vm1, %v37_v11  ;;  %v38_v60 = vpack.c.bf16 %v33_v58, %v32_v57  ;;  %v35_v61 = vld [vmem:[%s1306_s0 + $0x38] sm:$0xff] }
   0xb   :  { %922 = vmatpush3.bf16.msra.mxu1 %v1120_v2  ;;  %925 = vmatprep.mubr.msk.bf16.mxu1 %vm1068_vm0, %v1067_v1  ;;  %v39_v62 = vpack.c.bf16 %v35_v61, %v34_v59 }
   0xc   :  { %923 = vmatprep.subr.bf16.mxu1 %v1067_v1  ;;  %930 = vmatpush3.bf16.msra.mxu0 %v1120_v2 }
   0xd   :  { %931 = vmatprep.subr.bf16.mxu0 %v1067_v1  ;;  %909 = vmatprep.mubr.msk.bf16.mxu0 %vm63_vm1, %v38_v60 }
   0xf   :  { %924 = vmatpush3.bf16.msra.mxu1 %v1131_v4 }
  0x10   :  { %932 = vmatpush3.bf16.msra.mxu0 %v1131_v4  ;;  %937 = vmatprep.subr.bf16.mxu1 %v1067_v1 }
  0x11   :  { %945 = vmatprep.subr.bf16.mxu0 %v1067_v1 }
  0x12   :  { %910 = vmatmul.mubr.msk.bf16.gmra.mxu0 %vm63_vm1, %v39_v62 }
  0x13   :  { %933 = vmatprep.mubr.msk.bf16.mxu0 %vm1068_vm0, %v1067_v1 }
  0x77   :  { %v1165_v13 = vpop.permute.xlu0 %213 }
  0xca   :  { %v195_v14 = vpop.f32.mrf.mxu1  ;;  %v1169_v19 = vpop.f32.mrf.mxu0 }
  0xcb   :  { %v216_v15 = vadd.f32 %v1165_v13, %v195_v14 }
  0xcc   :  { %v919_v16 = vpop.f32.mrf.mxu1  ;;  %v110_v21 = vpop.f32.mrf.mxu0 }
  0xcd   :  { %218 = vrot.lane.b32.xlu0 %v216_v15, %s1069_s17  ;;  %v111_v22 = vadd.f32 %v1174_v20, %v110_v21 }
  0xce   :  { %v198_v17 = vpop.f32.mrf.mxu1  ;;  %v1189_v45 = vpop.f32.mrf.mxu0 }
  0xcf   :  { %v201_v23 = vadd.f32 %v195_v14, %v111_v22 }
  0xd0   :  { %v920_v18 = vpop.f32.mrf.mxu1  ;;  %v113_v46 = vpop.f32.mrf.mxu0 }
  0xd1   :  { %v848_v24 = vmul.f32 -1.442695, %v201_v23  ;;  %v114_v47 = vadd.f32 %v1174_v20, %v113_v46 }
  0xd2   :  { %v1218_v10 = vpop.f32.mrf.mxu0 }
  0xd3   :  { %997 = vpow2.f32 %v848_v24 }
  0xd4   :  { %v1220_v11 = vpop.f32.mrf.mxu0 }
  0xd6   :  { %v1222_v12 = vpop.f32.mrf.mxu0 }
  0xd8   :  { %v1224_v14 = vpop.f32.mrf.mxu0 }
  0xe0   :  { %v998_v25 = vpop.eup %997 }
  0xe1   :  { %v205_v26 = vadd.f32 1.0, %v998_v25 }
  0xe3   :  { %999 = vrcp.f32 %v205_v26 }
  0xf0   :  { %v1000_v27 = vpop.eup %999 }
  0xf1   :  { %v228_v33 = vsub.f32 1.0, %v1000_v27  ;;  %v234_v35 = vmul.f32 0.0, %v1000_v27 }
 0x13f   :  { %v219_v28 = vpop.permute.xlu0 %218 }
 0x140   :  { %v221_v29 = vmul.f32 %v1000_v27, %v219_v28 }
 0x142   :  { %223 = vrot.lane.b32.xlu1 %v221_v29, %s1069_s17 }
 0x1b4   :  { %v224_v30 = vpop.permute.xlu1 %223 }
 0x1b5   :  { %v226_v31 = vadd.f32 %v224_v30, %v111_v22  ;;  %v119_v22 = vadd.f32 %v1169_v19, %v1174_v20 }
 0x1b7   :  { %1001 = vtanh.f32 %v226_v31 }
 0x1c4   :  { %v1002_v32 = vpop.eup %1001 }
 0x1c5   :  { %230 = vrot.lane.b32.xlu1 %v1002_v32, %s1071_s3 }
 0x237   :  { %v231_v34 = vpop.permute.xlu1 %230 }
 0x238   :  { %v233_v36 = vmul.f32 %v231_v34, %v228_v33 }
 0x23a   :  { %v235_v37 = vadd.f32 %v234_v35, %v233_v36 }
 0x23c   :  { %v236_v38 = vpack.c.bf16 %v235_v37, %v235_v37 }
 0x23e   :  { %238 = vrot.lane.b32.xlu0 %v236_v38, %s1071_s3 }
 0x2b0   :  { %v239_v39 = vpop.permute.xlu0 %238 }
 0x2b1   :  { %926 = vmatmul.mubr.msk.bf16.vlgmr.msra.gmra.mxu1 %vm63_vm1, %v239_v39 }
 0x2b2   :  { %938 = vmatpush3.bf16.msra.mxu1 %v1120_v2  ;;  %941 = vmatprep.mubr.msk.bf16.mxu1 %vm1068_vm0, %v1067_v1 }
 0x2b3   :  { %939 = vmatprep.subr.bf16.mxu1 %v1067_v1 }
 0x2b6   :  { %940 = vmatpush3.bf16.msra.mxu1 %v1131_v4 }
 0x2b7   :  { %953 = vmatprep.subr.bf16.mxu1 %v1067_v1 }
 0x371   :  { %v277_v40 = vpop.f32.mrf.mxu1 }
 0x372   :  { %v290_v41 = vadd.f32 %v277_v40, %v1165_v13  ;;  %v283_v48 = vadd.f32 %v277_v40, %v114_v47 }
 0x373   :  { %v927_v42 = vpop.f32.mrf.mxu1 }
 0x374   :  { %292 = vrot.lane.b32.xlu1 %v290_v41, %s1069_s17  ;;  %v851_v49 = vmul.f32 -1.442695, %v283_v48 }
 0x375   :  { %v280_v43 = vpop.f32.mrf.mxu1 }
 0x376   :  { %1003 = vpow2.f32 %v851_v49 }
 0x377   :  { %v928_v44 = vpop.f32.mrf.mxu1 }
 0x378   :  { %v122_v44 = vadd.f32 %v1189_v45, %v1174_v20 }
 0x383   :  { %v1004_v50 = vpop.eup %1003 }
 0x384   :  { %v287_v51 = vadd.f32 1.0, %v1004_v50 }
 0x386   :  { %1005 = vrcp.f32 %v287_v51 }
 0x393   :  { %v1006_v52 = vpop.eup %1005 }
 0x394   :  { %v302_v0 = vsub.f32 1.0, %v1006_v52  ;;  %v308_v5 = vmul.f32 %v1006_v52, %v235_v37 }
 0x3e6   :  { %v293_v53 = vpop.permute.xlu1 %292 }
 0x3e7   :  { %v295_v54 = vmul.f32 %v1006_v52, %v293_v53 }
 0x3e9   :  { %297 = vrot.lane.b32.xlu0 %v295_v54, %s1069_s17 }
 0x45b   :  { %v298_v55 = vpop.permute.xlu0 %297 }
 0x45c   :  { %v300_v56 = vadd.f32 %v298_v55, %v114_v47 }
 0x45e   :  { %1007 = vtanh.f32 %v300_v56 }
 0x46b   :  { %v1008_v63 = vpop.eup %1007 }
 0x46c   :  { %304 = vrot.lane.b32.xlu1 %v1008_v63, %s1071_s3 }
 0x4de   :  { %v305_v3 = vpop.permute.xlu1 %304 }
 0x4df   :  { %v307_v6 = vmul.f32 %v305_v3, %v302_v0 }
 0x4e1   :  { %v309_v7 = vadd.f32 %v308_v5, %v307_v6  ;;  %v127_v6 = vadd.f32 %v1174_v20, %v1220_v11 }
 0x4e3   :  { %v310_v8 = vpack.c.bf16 %v309_v7, %v309_v7 }
 0x4e5   :  { %312 = vrot.lane.b32.xlu0 %v310_v8, %s1071_s3 }
 0x557   :  { %v313_v9 = vpop.permute.xlu0 %312 }
 0x558   :  { %934 = vmatmul.mubr.msk.bf16.vlgmr.msra.gmra.mxu0 %vm63_vm1, %v313_v9 }
 0x559   :  { %946 = vmatpush3.bf16.msra.mxu0 %v1120_v2  ;;  %949 = vmatprep.mubr.msk.bf16.mxu0 %vm1068_vm0, %v1067_v1 }
 0x55a   :  { %947 = vmatprep.subr.bf16.mxu0 %v1067_v1 }
 0x55d   :  { %948 = vmatpush3.bf16.msra.mxu0 %v1131_v4 }
 0x55e   :  { %961 = vmatprep.subr.bf16.mxu0 %v1067_v1 }
 0x618   :  { %v351_v15 = vpop.f32.mrf.mxu0 }
 0x619   :  { %v364_v16 = vadd.f32 %v351_v15, %v1165_v13  ;;  %v357_v23 = vadd.f32 %v351_v15, %v119_v22 }
 0x61a   :  { %v935_v17 = vpop.f32.mrf.mxu0 }
 0x61b   :  { %366 = vrot.lane.b32.xlu1 %v364_v16, %s1069_s17  ;;  %v853_v24 = vmul.f32 -1.442695, %v357_v23 }
 0x61c   :  { %v354_v18 = vpop.f32.mrf.mxu0 }
 0x61d   :  { %1009 = vpow2.f32 %v853_v24 }
 0x61e   :  { %v936_v21 = vpop.f32.mrf.mxu0 }
 0x62a   :  { %v1010_v25 = vpop.eup %1009 }
 0x62b   :  { %v361_v26 = vadd.f32 1.0, %v1010_v25 }
 0x62d   :  { %1011 = vrcp.f32 %v361_v26 }
 0x63a   :  { %v1012_v27 = vpop.eup %1011 }
 0x63b   :  { %v376_v33 = vsub.f32 1.0, %v1012_v27  ;;  %v382_v19 = vmul.f32 %v1012_v27, %v309_v7 }
 0x68d   :  { %v367_v28 = vpop.permute.xlu1 %366 }
 0x68e   :  { %v369_v29 = vmul.f32 %v1012_v27, %v367_v28 }
 0x690   :  { %371 = vrot.lane.b32.xlu0 %v369_v29, %s1069_s17 }
 0x702   :  { %v372_v30 = vpop.permute.xlu0 %371 }
 0x703   :  { %v374_v31 = vadd.f32 %v372_v30, %v119_v22 }
 0x705   :  { %1013 = vtanh.f32 %v374_v31 }
 0x712   :  { %v1014_v32 = vpop.eup %1013 }
 0x713   :  { %378 = vrot.lane.b32.xlu1 %v1014_v32, %s1071_s3 }
 0x785   :  { %v379_v34 = vpop.permute.xlu1 %378 }
 0x786   :  { %v381_v35 = vmul.f32 %v379_v34, %v376_v33 }
 0x788   :  { %v383_v36 = vadd.f32 %v382_v19, %v381_v35  ;;  %v130_v19 = vadd.f32 %v1174_v20, %v1224_v14 }
 0x78a   :  { %v384_v37 = vpack.c.bf16 %v383_v36, %v383_v36 }
 0x78c   :  { %386 = vrot.lane.b32.xlu0 %v384_v37, %s1071_s3 }
 0x7fe   :  { %v387_v38 = vpop.permute.xlu0 %386 }
 0x7ff   :  { %942 = vmatmul.mubr.msk.bf16.vlgmr.msra.gmra.mxu1 %vm63_vm1, %v387_v38 }
 0x800   :  { %954 = vmatpush3.bf16.msra.mxu1 %v1120_v2  ;;  %957 = vmatprep.mubr.msk.bf16.mxu1 %vm1068_vm0, %v1067_v1 }
 0x801   :  { %955 = vmatprep.subr.bf16.mxu1 %v1067_v1 }
 0x804   :  { %956 = vmatpush3.bf16.msra.mxu1 %v1131_v4 }
 0x805   :  { %969 = vmatprep.subr.bf16.mxu1 %v1067_v1 }
 0x8bf   :  { %v425_v39 = vpop.f32.mrf.mxu1 }
 0x8c0   :  { %v438_v40 = vadd.f32 %v425_v39, %v1165_v13  ;;  %v431_v46 = vadd.f32 %v425_v39, %v122_v44 }
 0x8c1   :  { %v943_v41 = vpop.f32.mrf.mxu1 }
 0x8c2   :  { %440 = vrot.lane.b32.xlu1 %v438_v40, %s1069_s17  ;;  %v855_v47 = vmul.f32 -1.442695, %v431_v46 }
 0x8c3   :  { %v428_v42 = vpop.f32.mrf.mxu1 }
 0x8c4   :  { %1015 = vpow2.f32 %v855_v47 }
 0x8c5   :  { %v944_v43 = vpop.f32.mrf.mxu1 }
 0x8d1   :  { %v1016_v48 = vpop.eup %1015 }
 0x8d2   :  { %v435_v49 = vadd.f32 1.0, %v1016_v48 }
 0x8d4   :  { %1017 = vrcp.f32 %v435_v49 }
 0x8e1   :  { %v1018_v50 = vpop.eup %1017 }
 0x8e2   :  { %v450_v56 = vsub.f32 1.0, %v1018_v50  ;;  %v456_v45 = vmul.f32 %v1018_v50, %v383_v36 }
 0x934   :  { %v441_v51 = vpop.permute.xlu1 %440 }
 0x935   :  { %v443_v52 = vmul.f32 %v1018_v50, %v441_v51 }
 0x937   :  { %445 = vrot.lane.b32.xlu0 %v443_v52, %s1069_s17 }
 0x9a9   :  { %v446_v53 = vpop.permute.xlu0 %445 }
 0x9aa   :  { %v448_v54 = vadd.f32 %v446_v53, %v122_v44 }
 0x9ac   :  { %1019 = vtanh.f32 %v448_v54 }
 0x9b9   :  { %v1020_v55 = vpop.eup %1019 }
 0x9ba   :  { %452 = vrot.lane.b32.xlu1 %v1020_v55, %s1071_s3  ;;  %v135_v55 = vadd.f32 %v1218_v10, %v1174_v20 }
 0xa2c   :  { %v453_v57 = vpop.permute.xlu1 %452 }
 0xa2d   :  { %v455_v58 = vmul.f32 %v453_v57, %v450_v56 }
 0xa2f   :  { %v457_v59 = vadd.f32 %v456_v45, %v455_v58 }
 0xa31   :  { %v458_v60 = vpack.c.bf16 %v457_v59, %v457_v59 }
 0xa33   :  { %460 = vrot.lane.b32.xlu0 %v458_v60, %s1071_s3 }
 0xaa5   :  { %v461_v61 = vpop.permute.xlu0 %460 }
 0xaa6   :  { %950 = vmatmul.mubr.msk.bf16.vlgmr.msra.gmra.mxu0 %vm63_vm1, %v461_v61 }
 0xaa7   :  { %962 = vmatpush3.bf16.msra.mxu0 %v1120_v2  ;;  %965 = vmatprep.mubr.msk.bf16.mxu0 %vm1068_vm0, %v1067_v1 }
 0xaa8   :  { %963 = vmatprep.subr.bf16.mxu0 %v1067_v1 }
 0xaab   :  { %964 = vmatpush3.bf16.msra.mxu0 %v1131_v4 }
 0xaac   :  { %977 = vmatprep.subr.bf16.mxu0 %v1067_v1 }
 0xb66   :  { %v499_v62 = vpop.f32.mrf.mxu0 }
 0xb67   :  { %v512_v63 = vadd.f32 %v499_v62, %v1165_v13  ;;  %v505_v7 = vadd.f32 %v499_v62, %v127_v6 }
 0xb68   :  { %v951_v0 = vpop.f32.mrf.mxu0 }
 0xb69   :  { %514 = vrot.lane.b32.xlu1 %v512_v63, %s1069_s17  ;;  %v857_v8 = vmul.f32 -1.442695, %v505_v7 }
 0xb6a   :  { %v502_v3 = vpop.f32.mrf.mxu0 }
 0xb6b   :  { %1021 = vpow2.f32 %v857_v8 }
 0xb6c   :  { %v952_v5 = vpop.f32.mrf.mxu0 }
 0xb78   :  { %v1022_v9 = vpop.eup %1021 }
 0xb79   :  { %v509_v15 = vadd.f32 1.0, %v1022_v9 }
 0xb7b   :  { %1023 = vrcp.f32 %v509_v15 }
 0xb88   :  { %v1024_v16 = vpop.eup %1023 }
 0xb89   :  { %v524_v24 = vsub.f32 1.0, %v1024_v16  ;;  %v530_v11 = vmul.f32 %v1024_v16, %v457_v59 }
 0xbdb   :  { %v515_v17 = vpop.permute.xlu1 %514 }
 0xbdc   :  { %v517_v18 = vmul.f32 %v1024_v16, %v515_v17 }
 0xbde   :  { %519 = vrot.lane.b32.xlu0 %v517_v18, %s1069_s17 }
 0xc50   :  { %v520_v21 = vpop.permute.xlu0 %519 }
 0xc51   :  { %v522_v22 = vadd.f32 %v520_v21, %v127_v6 }
 0xc53   :  { %1025 = vtanh.f32 %v522_v22  ;;  %v138_v22 = vadd.f32 %v1222_v12, %v1174_v20  ;;  %v996_v20 = vld [vmem:[%s1311_s5] sm:$0xff]  }
 0xc60   :  { %v1026_v23 = vpop.eup %1025 }
 0xc61   :  { %526 = vrot.lane.b32.xlu1 %v1026_v23, %s1071_s3 }
 0xcd3   :  { %v527_v25 = vpop.permute.xlu1 %526 }
 0xcd4   :  { %v529_v26 = vmul.f32 %v527_v25, %v524_v24 }
 0xcd6   :  { %v531_v27 = vadd.f32 %v530_v11, %v529_v26 }
 0xcd8   :  { %v532_v28 = vpack.c.bf16 %v531_v27, %v531_v27 }
 0xcda   :  { %534 = vrot.lane.b32.xlu0 %v532_v28, %s1071_s3 }
 0xd4c   :  { %v535_v29 = vpop.permute.xlu0 %534 }
 0xd4d   :  { %958 = vmatmul.mubr.msk.bf16.vlgmr.msra.gmra.mxu1 %vm63_vm1, %v535_v29 }
 0xd4e   :  { %970 = vmatpush3.bf16.msra.mxu1 %v1120_v2  ;;  %973 = vmatprep.mubr.msk.bf16.mxu1 %vm1068_vm0, %v1067_v1 }
 0xd4f   :  { %971 = vmatprep.subr.bf16.mxu1 %v1067_v1 }
 0xd52   :  { %972 = vmatpush3.bf16.msra.mxu1 %v1131_v4 }
 0xe0d   :  { %v573_v30 = vpop.f32.mrf.mxu1 }
 0xe0e   :  { %v586_v31 = vadd.f32 %v573_v30, %v1165_v13  ;;  %v579_v35 = vadd.f32 %v573_v30, %v130_v19  ;;  %v995_v30 = vld [vmem:[%s1311_s5 + $0x8] sm:$0xff]   ;;  %s1072_s5 = smov [#allocation2]  }
 0xe0f   :  { %v959_v32 = vpop.f32.mrf.mxu1  ;;  %s831_s9 = sshll.u32 %s1072_s5, 4  ;;  %s832_s9 = int_to_ptr.vmem [resolvable:$true] %s831_s9 }
 0xe10   :  { %588 = vrot.lane.b32.xlu1 %v586_v31, %s1069_s17  ;;  %v859_v2 = vmul.f32 -1.442695, %v579_v35  ;;  %s1045_s10 = scalar_lea.vmem %s832_s9, 128  ;;  %p1050_p1 = scmp.lt.s32.totalorder %s832_s9, %s832_s9 }
 0xe11   :  { %v576_v33 = vpop.f32.mrf.mxu1  ;;  %p1046_p0 = scmp.ne.s32.totalorder %s832_s9, %s1045_s10  ;;  %p1051_p2 = scmp.lt.s32.totalorder %s1045_s10, %s1045_s10 }
 0xe12   :  { %1027 = vpow2.f32 %v859_v2 }
 0xe13   :  { %v960_v34 = vpop.f32.mrf.mxu1  ;;  %p1052_p3 = por %p1051_p2, %p1050_p1 }
 0xe15   :  { %p1053_p4 = pnand %p1052_p3, %p1046_p0 }
 0xe1f   :  { %v1028_v36 = vpop.eup %1027 }
 0xe20   :  { %v583_v37 = vadd.f32 1.0, %v1028_v36  ;;  %v864_v36 = vld [vmem:[%s1312_s6] ss:$0 sm:$0xff] }
 0xe22   :  { %1029 = vrcp.f32 %v583_v37 }
 0xe2f   :  { %v1030_v38 = vpop.eup %1029 }
 0xe30   :  { %v598_v43 = vsub.f32 1.0, %v1030_v38  ;;  %v604_v14 = vmul.f32 %v1030_v38, %v531_v27 }
 0xe82   :  { %v589_v39 = vpop.permute.xlu1 %588 }
 0xe83   :  { %v591_v4 = vmul.f32 %v1030_v38, %v589_v39 }
 0xe85   :  { %593 = vrot.lane.b32.xlu0 %v591_v4, %s1069_s17 }
 0xef7   :  { %v594_v40 = vpop.permute.xlu0 %593 }
 0xef8   :  { %v596_v41 = vadd.f32 %v594_v40, %v130_v19 }
 0xefa   :  { %1031 = vtanh.f32 %v596_v41 }
 0xf07   :  { %v1032_v42 = vpop.eup %1031 }
 0xf08   :  { %600 = vrot.lane.b32.xlu1 %v1032_v42, %s1071_s3 }
 0xf7a   :  { %v601_v44 = vpop.permute.xlu1 %600 }
 0xf7b   :  { %v603_v46 = vmul.f32 %v601_v44, %v598_v43 }
 0xf7d   :  { %v605_v47 = vadd.f32 %v604_v14, %v603_v46 }
 0xf7f   :  { %v606_v48 = vpack.c.bf16 %v605_v47, %v605_v47 }
 0xf81   :  { %608 = vrot.lane.b32.xlu0 %v606_v48, %s1071_s3 }
 0xff3   :  { %v609_v49 = vpop.permute.xlu0 %608 }
 0xff4   :  { %966 = vmatmul.mubr.msk.bf16.vlgmr.msra.gmra.mxu0 %vm63_vm1, %v609_v49 }
 0xff5   :  { %981 = vmatprep.mubr.msk.bf16.mxu0 %vm1068_vm0, %v1067_v1  ;;  %978 = vmatpush3.bf16.msra.mxu0 %v995_v30 }
 0xff6   :  { %979 = vmatprep.subr.bf16.mxu0 %v1067_v1 }
 0xff9   :  { %980 = vmatpush3.bf16.msra.mxu0 %v996_v20 }
0x10b4   :  { %v647_v50 = vpop.f32.mrf.mxu0 }
0x10b5   :  { %v660_v51 = vadd.f32 %v647_v50, %v1165_v13  ;;  %v653_v56 = vadd.f32 %v647_v50, %v135_v55 }
0x10b6   :  { %v967_v52 = vpop.f32.mrf.mxu0 }
0x10b7   :  { %662 = vrot.lane.b32.xlu1 %v660_v51, %s1069_s17  ;;  %v861_v57 = vmul.f32 -1.442695, %v653_v56 }
0x10b8   :  { %v650_v53 = vpop.f32.mrf.mxu0 }
0x10b9   :  { %1033 = vpow2.f32 %v861_v57 }
0x10ba   :  { %v968_v54 = vpop.f32.mrf.mxu0 }
0x10c6   :  { %v1034_v45 = vpop.eup %1033 }
0x10c7   :  { %v657_v58 = vadd.f32 1.0, %v1034_v45 }
0x10c9   :  { %1035 = vrcp.f32 %v657_v58 }
0x10d6   :  { %v1036_v59 = vpop.eup %1035 }
0x10d7   :  { %v672_v3 = vsub.f32 1.0, %v1036_v59  ;;  %v678_v10 = vmul.f32 %v1036_v59, %v605_v47 }
0x1129   :  { %v663_v60 = vpop.permute.xlu1 %662 }
0x112a   :  { %v665_v61 = vmul.f32 %v1036_v59, %v663_v60 }
0x112c   :  { %667 = vrot.lane.b32.xlu0 %v665_v61, %s1069_s17 }
0x119e   :  { %v668_v62 = vpop.permute.xlu0 %667 }
0x119f   :  { %v670_v63 = vadd.f32 %v668_v62, %v135_v55 }
0x11a1   :  { %1037 = vtanh.f32 %v670_v63 }
0x11ae   :  { %v1038_v0 = vpop.eup %1037 }
0x11af   :  { %674 = vrot.lane.b32.xlu1 %v1038_v0, %s1071_s3 }
0x1221   :  { %v675_v5 = vpop.permute.xlu1 %674 }
0x1222   :  { %v677_v6 = vmul.f32 %v675_v5, %v672_v3 }
0x1224   :  { %v679_v7 = vadd.f32 %v678_v10, %v677_v6 }
0x1226   :  { %v680_v8 = vpack.c.bf16 %v679_v7, %v679_v7 }
0x1228   :  { %682 = vrot.lane.b32.xlu0 %v680_v8, %s1071_s3 }
0x129a   :  { %v683_v9 = vpop.permute.xlu0 %682 }
0x129b   :  { %974 = vmatmul.mubr.msk.bf16.vlgmr.msra.gmra.mxu1 %vm63_vm1, %v683_v9 }
0x135b   :  { %v721_v15 = vpop.f32.mrf.mxu1 }
0x135c   :  { %v734_v16 = vadd.f32 %v721_v15, %v1165_v13  ;;  %v727_v23 = vadd.f32 %v721_v15, %v138_v22 }
0x135d   :  { %v975_v17 = vpop.f32.mrf.mxu1 }
0x135e   :  { %736 = vrot.lane.b32.xlu1 %v734_v16, %s1069_s17  ;;  %v863_v24 = vmul.f32 -1.442695, %v727_v23 }
0x135f   :  { %v724_v18 = vpop.f32.mrf.mxu1 }
0x1360   :  { %1039 = vpow2.f32 %v863_v24 }
0x1361   :  { %v976_v21 = vpop.f32.mrf.mxu1 }
0x136d   :  { %v1040_v25 = vpop.eup %1039 }
0x136e   :  { %v731_v11 = vadd.f32 1.0, %v1040_v25 }
0x1370   :  { %1041 = vrcp.f32 %v731_v11 }
0x137d   :  { %v1042_v26 = vpop.eup %1041 }
0x137e   :  { %v746_v31 = vsub.f32 1.0, %v1042_v26  ;;  %v752_v33 = vmul.f32 %v1042_v26, %v679_v7 }
0x13d0   :  { %v737_v27 = vpop.permute.xlu1 %736 }
0x13d1   :  { %v739_v28 = vmul.f32 %v1042_v26, %v737_v27 }
0x13d3   :  { %741 = vrot.lane.b32.xlu0 %v739_v28, %s1069_s17 }
0x1445   :  { %v742_v13 = vpop.permute.xlu0 %741 }
0x1446   :  { %v744_v29 = vadd.f32 %v742_v13, %v138_v22 }
0x1448   :  { %1043 = vtanh.f32 %v744_v29 }
0x1455   :  { %v1044_v12 = vpop.eup %1043 }
0x1456   :  { %748 = vrot.lane.b32.xlu1 %v1044_v12, %s1071_s3 }
0x14c8   :  { %v749_v32 = vpop.permute.xlu1 %748 }
0x14c9   :  { %v751_v34 = vmul.f32 %v749_v32, %v746_v31 }
0x14cb   :  { %v753_v19 = vadd.f32 %v752_v33, %v751_v34 }
0x14cd   :  { %v754_v35 = vpack.c.bf16 %v753_v19, %v753_v19 }
0x14cf   :  { %767 = vrot.lane.b32.xlu0 %v754_v35, %s1071_s3 }
0x1541   :  { %v768_v2 = vpop.permute.xlu0 %767 }
0x1542   :  { %982 = vmatmul.mubr.msk.bf16.vlgmr.msra.gmra.mxu0 %vm63_vm1, %v768_v2 }
0x1602   :  { %v818_v1 = vpop.f32.mrf.mxu0 }
0x1603   :  { %v819_v37 = vadd.f32 %v864_v36, %v818_v1 }
0x1604   :  { %v983_v38 = vpop.f32.mrf.mxu0 }
0x1605   :  { %824 = vst [vmem:[#allocation2] sm:$0xff] %v819_v37 }
0x1606   :  { %v821_v39 = vpop.f32.mrf.mxu0 }
0x1607   :  { %1056 = shalt.err (!%p1053_p4)
}
0x1608   :  { %834 = dma.vmem_to_hbm [thread:$0]  %s832_s9, 128, %s1313_s7, [#allocation3]   ;;  %v984_v4 = vpop.f32.mrf.mxu0 }
0x1609   :  { %1065 = dma.done.wait [#allocation3], 128  }
0x160a   :  { %1066 = vsyncadd [#allocation3], 4294967168 }
0x160b   :  { %838 = vsyncpa [#allocation3], 1 }

</bundles_post_ra>
